<compile_context>
chip_gen: v7x
topology: tpu7x:2x2x1
jax: 0.10.0
libtpu: 0.0.40
codegen_flags: <defaults>
</compile_context>

<pallas_src>
import numpy as np
import jax
import jax.numpy as jnp
from jax import lax
from jax.experimental import pallas as pl
from jax.experimental.pallas import tpu as pltpu

# ---------------- config (small synthetic shapes) ----------------
BATCH         = 2
SEQ           = 64
IN_DIM        = 32
OUT_DIM       = 128          # lane-dense output (multiple of 128)
BN_EPS        = 1e-5
MAX_TILE_ROWS = 512          # upper bound on rows per grid step (sweepable)


def _round_up(n, m):
    return ((n + m - 1) // m) * m


# ---------------- kernel ----------------
def _fused_linear_bn_relu_kernel(x_ref, w_ref, b_ref, o_ref):
    # One MXU push per row tile (bf16 operands, f32 accumulate);
    # bias add + ReLU on the VPU in f32; bf16 store.
    y = jnp.dot(x_ref[...], w_ref[...], preferred_element_type=jnp.float32)
    y = jnp.maximum(y + b_ref[...], 0.0)
    o_ref[...] = y.astype(o_ref.dtype)


# ---------------- wrapper ----------------
def eigen_mlp_layer(x, params):
    """Eval-mode EigenMLPLayer: x [..., IN_DIM] -> bf16 [..., OUT_DIM]."""
    # Host-side fold of Linear + BatchNorm1d(running stats) into one affine.
    s = params["bn_gamma"] * lax.rsqrt(params["bn_var"] + BN_EPS)           # [OUT]
    w_fold = (params["w"].T * s[None, :]).astype(jnp.bfloat16)              # [IN, OUT] bf16
    b_fold = ((params["b"] - params["bn_mean"]) * s
              + params["bn_beta"]).astype(jnp.float32)[None, :]             # [1, OUT] f32

    lead_shape = x.shape[:-1]
    rows = int(np.prod(lead_shape))
    x2 = x.reshape(rows, x.shape[-1]).astype(jnp.bfloat16)

    # Big row tiles (multiple of 16 for bf16 sublane packing); no host-side
    # padding of x — the ragged last block (if any) is handled by Pallas.
    tile_rows = min(MAX_TILE_ROWS, _round_up(rows, 16))
    grid = (pl.cdiv(rows, tile_rows),)

    dtype_bytes_in, dtype_bytes_out = 2, 2   # bf16 in / bf16 out
    cost = pl.CostEstimate(
        flops=2 * rows * IN_DIM * OUT_DIM,
        transcendentals=0,
        bytes_accessed=(rows * IN_DIM * dtype_bytes_in
                        + IN_DIM * OUT_DIM * dtype_bytes_in
                        + OUT_DIM * 4
                        + rows * OUT_DIM * dtype_bytes_out),
    )

    out = pl.pallas_call(
        _fused_linear_bn_relu_kernel,
        out_shape=jax.ShapeDtypeStruct((rows, OUT_DIM), jnp.bfloat16),
        grid=grid,
        in_specs=[
            pl.BlockSpec((tile_rows, IN_DIM), lambda i: (i, 0)),   # row tile of x
            pl.BlockSpec((IN_DIM, OUT_DIM), lambda i: (0, 0)),     # full folded weight
            pl.BlockSpec((1, OUT_DIM), lambda i: (0, 0)),          # full folded bias
        ],
        out_specs=pl.BlockSpec((tile_rows, OUT_DIM), lambda i: (i, 0)),
        compiler_params=pltpu.CompilerParams(
            dimension_semantics=("parallel",),   # row tiles are independent
        ),
        cost_estimate=cost,
    )(x2, w_fold, b_fold)

    return out.reshape(*lead_shape, OUT_DIM)


# ---------------- parameters (PyTorch-convention layouts) ----------------
def init_params(key):
    ks = jax.random.split(key, 6)
    w = jax.random.normal(ks[0], (OUT_DIM, IN_DIM), jnp.float32) / np.sqrt(IN_DIM)
    b = 0.01 * jax.random.normal(ks[1], (OUT_DIM,), jnp.float32)
    return {
        "w": w,                                                              # [out, in]
        "b": b,
        "bn_gamma": 1.0 + 0.1 * jax.random.normal(ks[2], (OUT_DIM,), jnp.float32),
        "bn_beta": 0.1 * jax.random.normal(ks[3], (OUT_DIM,), jnp.float32),
        "bn_mean": 0.05 * jax.random.normal(ks[4], (OUT_DIM,), jnp.float32),
        "bn_var": jnp.abs(1.0 + 0.1 * jax.random.normal(ks[5], (OUT_DIM,), jnp.float32)),
    }


def _reference(x, params):
    """Pure-JAX f32 eval-mode reference (linear -> BN(running stats) -> ReLU)."""
    y = x.reshape(-1, IN_DIM) @ params["w"].T + params["b"]
    y = (y - params["bn_mean"]) * lax.rsqrt(params["bn_var"] + BN_EPS)
    y = y * params["bn_gamma"] + params["bn_beta"]
    y = jnp.maximum(y, 0.0)                     # dropout = identity in eval mode
    return y.reshape(*x.shape[:-1], OUT_DIM)


if __name__ == "__main__":
    key = jax.random.PRNGKey(0)
    pkey, dkey = jax.random.split(key)
    params = init_params(pkey)
    x = jax.random.normal(dkey, (BATCH, SEQ, IN_DIM), jnp.float32)

    y = eigen_mlp_layer(x, params)
    jax.block_until_ready(y)

    y_ref = _reference(x, params)
    assert y.shape == (BATCH, SEQ, OUT_DIM)
    # bf16 MXU feed + bf16 output => loosened tolerance vs the f32 reference.
    np.testing.assert_allclose(np.asarray(y.astype(jnp.float32)),
                               np.asarray(y_ref),
                               rtol=5e-2, atol=5e-2)
    print("KERNEL_OK")
</pallas_src>

<mosaic_0001>
module attributes {stable_mosaic.version = 11 : i64} {
  func.func @_fused_linear_bn_relu_kernel(%arg0: i32, %arg1: memref<128x32xbf16, #tpu.memory_space<vmem>>, %arg2: memref<32x128xbf16, #tpu.memory_space<vmem>>, %arg3: memref<1x128xf32, #tpu.memory_space<vmem>>, %arg4: memref<128x128xbf16, #tpu.memory_space<vmem>>) attributes {dimension_semantics = [#tpu.dimension_semantics<parallel>], iteration_bounds = array<i64: 1>, scalar_prefetch = 0 : i64, scratch_operands = 0 : i64, tpu.core_type = #tpu.core_type<tc>, window_params = [{transform_indices = @transform_0, window_bounds = array<i64: 128, 32>}, {pipeline_mode = #tpu.pipeline_mode<synchronous>, transform_indices = @transform_1, window_bounds = array<i64: 32, 128>}, {pipeline_mode = #tpu.pipeline_mode<synchronous>, transform_indices = @transform_2, window_bounds = array<i64: 1, 128>}, {transform_indices = @transform_3, window_bounds = array<i64: 128, 128>}]} {
    %c0 = arith.constant 0 : index
    %c0_0 = arith.constant 0 : index
    %0 = vector.load %arg1[%c0, %c0_0] : memref<128x32xbf16, #tpu.memory_space<vmem>>, vector<128x32xbf16>
    %c0_1 = arith.constant 0 : index
    %c0_2 = arith.constant 0 : index
    %1 = vector.load %arg2[%c0_1, %c0_2] : memref<32x128xbf16, #tpu.memory_space<vmem>>, vector<32x128xbf16>
    %cst = arith.constant dense<0.000000e+00> : vector<128x128xf32>
    %2 = tpu.matmul %0, %1, %cst {dimension_numbers = #tpu.dot_dimension_numbers<[1], [0], [0], [1], [0, 0, 1, 1], [], []>} : vector<128x32xbf16>, vector<32x128xbf16>, vector<128x128xf32> -> vector<128x128xf32>
    %c0_3 = arith.constant 0 : index
    %c0_4 = arith.constant 0 : index
    %3 = vector.load %arg3[%c0_3, %c0_4] : memref<1x128xf32, #tpu.memory_space<vmem>>, vector<1x128xf32>
    %4 = vector.broadcast %3 : vector<1x128xf32> to vector<128x128xf32>
    %5 = arith.addf %2, %4 : vector<128x128xf32>
    %cst_5 = arith.constant 0.000000e+00 : f32
    %6 = vector.broadcast %cst_5 : f32 to vector<128x128xf32>
    %7 = arith.maximumf %5, %6 : vector<128x128xf32>
    %8 = arith.truncf %7 : vector<128x128xf32> to vector<128x128xbf16>
    %c0_6 = arith.constant 0 : index
    %c0_7 = arith.constant 0 : index
    %9 = vector.load %arg4[%c0_6, %c0_7] : memref<128x128xbf16, #tpu.memory_space<vmem>>, vector<128x128xbf16>
    tpu.vector_store %arg4[%c0_6, %c0_7], %8 {strides = array<i32>} : memref<128x128xbf16, #tpu.memory_space<vmem>>, vector<128x128xbf16>,
    return
  }
  func.func @transform_0(%arg0: i32) -> (i32, i32) {
    %c0_i32 = arith.constant 0 : i32
    %c0_i32_0 = arith.constant 0 : i32
    return %arg0, %c0_i32 : i32, i32
  }
  func.func @transform_1(%arg0: i32) -> (i32, i32) {
    %c0_i32 = arith.constant 0 : i32
    %c0_i32_0 = arith.constant 0 : i32
    %c0_i32_1 = arith.constant 0 : i32
    return %c0_i32, %c0_i32_0 : i32, i32
  }
  func.func @transform_2(%arg0: i32) -> (i32, i32) {
    %c0_i32 = arith.constant 0 : i32
    %c0_i32_0 = arith.constant 0 : i32
    %c0_i32_1 = arith.constant 0 : i32
    return %c0_i32, %c0_i32_0 : i32, i32
  }
  func.func @transform_3(%arg0: i32) -> (i32, i32) {
    %c0_i32 = arith.constant 0 : i32
    %c0_i32_0 = arith.constant 0 : i32
    return %arg0, %c0_i32 : i32, i32
  }
}

</mosaic_0001>

<bundles_post_ra>
// kernel: tpu_custom_call.1
= control target key start
LH: loop header
LB: loop body
LE: loop exit
PB: predicated region body
PF: predicated region fallthrough
CT: control target
= control target key end

     0   :  { %vm95_vm0 = vcmask 261120   ;;  %s574_s0 = inlined_call_operand.vmem [shape: bf16[128,32], index: 0, kind: input, shape index: {}]   ;;  %s575_s1 = inlined_call_operand.vmem [shape: bf16[32,128], index: 1, kind: input, shape index: {}]   ;;  %s576_s2 = inlined_call_operand.vmem [shape: f32[1,128], index: 2, kind: input, shape index: {}]   ;;  %s577_s3 = inlined_call_operand.hbm [shape: bf16[128,128], index: 3, kind: output, shape index: {}]  }
   0x1   :  { %v464_v0 = vld [vmem:[%s575_s1] sm:$0xff]   ;;  %v465_v1 = vld [vmem:[%s575_s1 + $0x8] sm:$0xff]   ;;  %v470_v6 = vld [vmem:[%s574_s0 + $0x10] sm:$0xff]  }
   0x2   :  { %437 = vmatprep.subr.bf16.mxu0 %v464_v0  ;;  %457 = vmatprep.subr.bf16.mxu1 %v464_v0  ;;  %v466_v2 = vld [vmem:[%s574_s0] sm:$0xff]   ;;  %v468_v4 = vld [vmem:[%s574_s0 + $0x8] sm:$0xff]   ;;  %v471_v7 = vld [vmem:[%s574_s0 + $0x30] sm:$0xff]  }
   0x3   :  { %438 = vmatpush3.bf16.msra.mxu0 %v464_v0  ;;  %459 = vmatpush3.bf16.msra.mxu1 %v464_v0  ;;  %v467_v3 = vld [vmem:[%s574_s0 + $0x20] sm:$0xff]   ;;  %v469_v5 = vld [vmem:[%s574_s0 + $0x28] sm:$0xff]  }
   0x4   :  { %439 = vmatprep.subr.bf16.mxu0 %v465_v1  ;;  %458 = vmatprep.subr.bf16.mxu1 %v465_v1 }
   0x5   :  { %441 = vmatprep.mubr.msk.bf16.mxu0 %vm95_vm0, %v466_v2  ;;  %449 = vmatprep.mubr.msk.bf16.mxu1 %vm95_vm0, %v467_v3 }
   0x7   :  { %440 = vmatpush3.bf16.msra.mxu0 %v465_v1  ;;  %460 = vmatpush3.bf16.msra.mxu1 %v465_v1 }
   0xa   :  { %442 = vmatmul.mubr.msk.bf16.vlgmr.msra.gmra.mrb[0].mxu0 %vm95_vm0, %v468_v4  ;;  %450 = vmatmul.mubr.msk.bf16.vlgmr.msra.gmra.mrb[0].mxu1 %vm95_vm0, %v469_v5 }
   0xb   :  { %8 = vsyncpa [#allocation3], 0  ;;  %445 = vmatprep.mubr.msk.bf16.mxu0 %vm95_vm0, %v470_v6  ;;  %453 = vmatprep.mubr.msk.bf16.mxu1 %vm95_vm0, %v471_v7  ;;  %v472_v8 = vld [vmem:[%s574_s0 + $0x18] sm:$0xff]   ;;  %v329_v10 = vld [vmem:[%s576_s2] ss:$0 sm:$0xff] }
   0xc   :  { %v473_v9 = vld [vmem:[%s574_s0 + $0x38] sm:$0xff]   ;;  %s498_s0 = smov [#allocation2]  }
   0xd   :  { %s318_s2 = sshll.u32 %s498_s0, 4  ;;  %s319_s2 = int_to_ptr.vmem [resolvable:$true] %s318_s2 }
   0xe   :  { %s474_s6 = scalar_lea.vmem %s319_s2, 1024  ;;  %p479_p1 = scmp.lt.s32.totalorder %s319_s2, %s319_s2 }
   0xf   :  { %p475_p0 = scmp.ne.s32.totalorder %s319_s2, %s474_s6  ;;  %p480_p2 = scmp.lt.s32.totalorder %s474_s6, %s474_s6 }
  0x11   :  { %p481_p3 = por %p480_p2, %p479_p1 }
  0x12   :  { %446 = vmatmul.mubr.msk.bf16.gmra.mrb[4].mxu0 %vm95_vm0, %v472_v8  ;;  %454 = vmatmul.mubr.msk.bf16.gmra.mrb[4].mxu1 %vm95_vm0, %v473_v9 }
  0x13   :  { %p482_p4 = pnand %p481_p3, %p475_p0 }
  0xdd   :  { %v443_v11 = vpop.f32.mrb[0].mxu0  ;;  %v451_v12 = vpop.f32.mrb[0].mxu1 }
  0xde   :  { %v163_v13 = vadd.f32 %v443_v11, %v329_v10  ;;  %v195_v14 = vadd.f32 %v451_v12, %v329_v10  ;;  %v154_v15 = vpop.f32.mrb[1].mxu0  ;;  %v186_v16 = vpop.f32.mrb[1].mxu1 }
  0xdf   :  { %v155_v17 = vadd.f32 %v329_v10, %v154_v15  ;;  %v187_v18 = vadd.f32 %v329_v10, %v186_v16  ;;  %v444_v19 = vpop.f32.mrb[2].mxu0  ;;  %v452_v20 = vpop.f32.mrb[2].mxu1 }
  0xe0   :  { %v166_v21 = vadd.f32 %v444_v19, %v329_v10  ;;  %v198_v22 = vadd.f32 %v452_v20, %v329_v10  ;;  %v157_v23 = vpop.f32.mrb[3].mxu0  ;;  %v189_v24 = vpop.f32.mrb[3].mxu1  ;;  %v219_v27 = vmax.f32 %v163_v13, 0.0  ;;  %v227_v28 = vmax.f32 %v195_v14, 0.0 }
  0xe1   :  { %v158_v25 = vadd.f32 %v329_v10, %v157_v23  ;;  %v190_v26 = vadd.f32 %v329_v10, %v189_v24  ;;  %v217_v31 = vmax.f32 %v155_v17, 0.0  ;;  %v225_v32 = vmax.f32 %v187_v18, 0.0 }
  0xe2   :  { %v220_v29 = vmax.f32 %v166_v21, 0.0  ;;  %v228_v30 = vmax.f32 %v198_v22, 0.0 }
  0xe3   :  { %v218_v33 = vmax.f32 %v158_v25, 0.0  ;;  %v226_v34 = vmax.f32 %v190_v26, 0.0 }
  0xe4   :  { %v388_v35 = vpack.c.bf16 %v220_v29, %v219_v27  ;;  %v408_v36 = vpack.c.bf16 %v228_v30, %v227_v28 }
  0xe5   :  { %v383_v37 = vpack.c.bf16 %v218_v33, %v217_v31  ;;  %v403_v38 = vpack.c.bf16 %v226_v34, %v225_v32  ;;  %v447_v39 = vpop.f32.mrb[4].mxu0  ;;  %v455_v40 = vpop.f32.mrb[4].mxu1 }
  0xe6   :  { %420 = vst [vmem:[#allocation2 + $0x8] sm:$0xff] %v388_v35   ;;  %424 = vst [vmem:[#allocation2 + $0x28] sm:$0xff] %v408_v36   ;;  %v179_v41 = vadd.f32 %v447_v39, %v329_v10  ;;  %v211_v42 = vadd.f32 %v455_v40, %v329_v10  ;;  %v170_v43 = vpop.f32.mrb[5].mxu0  ;;  %v202_v44 = vpop.f32.mrb[5].mxu1 }
  0xe7   :  { %384 = vst [vmem:[#allocation2] sm:$0xff] %v383_v37   ;;  %423 = vst [vmem:[#allocation2 + $0x20] sm:$0xff] %v403_v38   ;;  %v171_v45 = vadd.f32 %v329_v10, %v170_v43  ;;  %v203_v46 = vadd.f32 %v329_v10, %v202_v44  ;;  %v448_v47 = vpop.f32.mrb[6].mxu0  ;;  %v456_v48 = vpop.f32.mrb[6].mxu1 }
  0xe8   :  { %v182_v49 = vadd.f32 %v448_v47, %v329_v10  ;;  %v214_v50 = vadd.f32 %v456_v48, %v329_v10  ;;  %v173_v51 = vpop.f32.mrb[7].mxu0  ;;  %v205_v52 = vpop.f32.mrb[7].mxu1  ;;  %v223_v55 = vmax.f32 %v179_v41, 0.0  ;;  %v231_v56 = vmax.f32 %v211_v42, 0.0 }
  0xe9   :  { %v174_v53 = vadd.f32 %v329_v10, %v173_v51  ;;  %v206_v54 = vadd.f32 %v329_v10, %v205_v52  ;;  %v221_v59 = vmax.f32 %v171_v45, 0.0  ;;  %v229_v60 = vmax.f32 %v203_v46, 0.0 }
  0xea   :  { %v224_v57 = vmax.f32 %v182_v49, 0.0  ;;  %v232_v58 = vmax.f32 %v214_v50, 0.0 }
  0xeb   :  { %v222_v61 = vmax.f32 %v174_v53, 0.0  ;;  %v230_v62 = vmax.f32 %v206_v54, 0.0 }
  0xec   :  { %v398_v63 = vpack.c.bf16 %v224_v57, %v223_v55  ;;  %v418_v0 = vpack.c.bf16 %v232_v58, %v231_v56 }
  0xed   :  { %v393_v1 = vpack.c.bf16 %v222_v61, %v221_v59  ;;  %v413_v2 = vpack.c.bf16 %v230_v62, %v229_v60 }
  0xee   :  { %422 = vst [vmem:[#allocation2 + $0x18] sm:$0xff] %v398_v63   ;;  %426 = vst [vmem:[#allocation2 + $0x38] sm:$0xff] %v418_v0  }
  0xef   :  { %421 = vst [vmem:[#allocation2 + $0x10] sm:$0xff] %v393_v1   ;;  %425 = vst [vmem:[#allocation2 + $0x30] sm:$0xff] %v413_v2  }
  0xf0   :  { %485 = shalt.err (!%p482_p4)
}
  0xf1   :  { %s486_s9 = scalar_lea.hbm %s577_s3, 1024 }
  0xf2   :  { %p487_p5 = scmp.ne.s32.totalorder %s577_s3, %s486_s9  ;;  %p490_p6 = scmp.lt.u32.totalorder %s486_s9, %s577_s3 }
  0xf4   :  { %p492_p7 = pnand %p490_p6, %p487_p5 }
  0xf6   :  { %495 = shalt.err (!%p492_p7)
}
  0xf7   :  { %s499_s14 = smov 64   ;;  %s500_s15 = smov 4  }
  0xf8   :  { %324 = dma.vmem_to_hbm [thread:$0]  %s319_s2, 1024, %s577_s3, [#allocation3], %s499_s14, %s499_s14, %s500_s15  }
  0xf9   :  { %496 = dma.done.wait [#allocation3], 1024  }
  0xfa   :  { %497 = vsyncadd [#allocation3], 4294966272 }
  0xfb   :  { %328 = vsyncpa [#allocation3], 1 }

</bundles_post_ra>
